<compile_context>
chip_gen: v6e
topology: v6e:2x2x1
jax: 0.10.0
libtpu: 0.0.40
codegen_flags: <defaults>
</compile_context>

<pallas_src>
import functools
import math

import jax
import jax.numpy as jnp
from jax.experimental import pallas as pl
from jax.experimental.pallas import tpu as pltpu

_LANE = 128


def _rup(x, m):
    """Round x up to a multiple of m."""
    return -(-x // m) * m


def _attention_math(q, k, v, mask, temperature):
    """Core math. q:(bn,Dk) k:(bn,L,Dk) v:(bn,L,Dv) -> ((bn,Dv) f32, (bn,L) f32).

    Multiplies run in the narrow input dtype when it is sub-32-bit (native bf16
    VPU on v6e/v7x); all reductions / softmax math accumulate in f32.  On v5e
    (no bf16 VPU) Mosaic upcasts the multiply itself, which is fine.
    """
    f32 = jnp.float32
    compute_dt = f32 if jnp.dtype(k.dtype).itemsize >= 4 else k.dtype
    scale = 1.0 / float(temperature)

    # Attention scores: batched mat-vec as VPU multiply + lane reduce (f32 acc).
    prod = q.astype(compute_dt)[:, None, :] * k.astype(compute_dt)      # (bn,L,Dk)
    scores = jnp.sum(prod.astype(f32), axis=-1) * scale                 # (bn,L)
    if mask is not None:
        # NOTE: a fully-masked row yields NaN attention, matching torch's
        # masked_fill(-inf) + softmax behavior.
        scores = jnp.where(mask, -jnp.inf, scores)

    # Numerically-stable softmax over L (torch dim=1); exp runs on the EUP.
    m = jnp.max(scores, axis=-1, keepdims=True)
    e = jnp.exp(scores - m)
    denom = jnp.sum(e, axis=-1, keepdims=True)
    # approx=False keeps full f32 accuracy; the kernel is HBM-bound with ample
    # compute slack so the exact reciprocal is not on the critical path.
    attn = e * pl.reciprocal(denom, approx=False)                       # (bn,L)

    # Attention-weighted values: broadcast over L, sublane reduce, f32 acc.
    w = attn if compute_dt == f32 else attn.astype(compute_dt)
    out = jnp.sum((w[:, :, None] * v.astype(compute_dt)).astype(f32), axis=1)
    return out, attn


def _make_kernel(*, has_mask, return_attn, temperature):
    def kernel(*refs):
        i = 0
        q_ref = refs[i]; i += 1
        k_ref = refs[i]; i += 1
        v_ref = refs[i]; i += 1
        mask = None
        if has_mask:
            mask = refs[i][...] != 0
            i += 1
        out_ref = refs[i]; i += 1
        attn_ref = refs[i] if return_attn else None

        out, attn = _attention_math(q_ref[...], k_ref[...], v_ref[...], mask,
                                    temperature)
        out_ref[...] = out.astype(out_ref.dtype)
        if return_attn:
            attn_ref[...] = attn.astype(attn_ref.dtype)

    return kernel


def mvsdpa_pallas(q, k, v, temperature, mask=None, *, return_attn=True,
                  vmem_budget_bytes=40 * 1024 * 1024,
                  vmem_limit_bytes=64 * 1024 * 1024):
    """Forward pass of MatrixVectorScaledDotProductAttention.

    Returns (output (N, d_v), attn (N, L)) when return_attn=True (module
    semantics), else just output.  Dropout is treated as identity (inference).
    """
    # TODO(synk): nn.Dropout(attn_dropout) is identity at inference; training-mode
    # stochastic dropout (torch RNG) is not reproduced here.
    N, Dk = q.shape
    Nk, L, Dk2 = k.shape
    Nv, Lv, Dv = v.shape
    assert N == Nk == Nv and Dk == Dk2 and L == Lv, "inconsistent q/k/v shapes"
    out_dtype = q.dtype
    itemsize = jnp.dtype(out_dtype).itemsize

    has_mask = mask is not None
    # dtype-dependent sublane multiple: f32 -> 8, bf16 -> 16, int8 -> 32.  The
    # int8 mask prefers 32-row alignment when present.
    sub_in = max(8, 32 // itemsize)
    sub = max(sub_in, 32) if has_mask else sub_in

    # ---- pad-aware per-row VMEM accounting (last dim -> 128 lanes, 2nd-to-last
    # -> sublane multiple).  BlockSpec double-buffers every in/out block; the
    # f32 intermediates inside the body are single-buffered.
    row_q = _rup(Dk, _LANE) * itemsize
    row_k = _rup(L, sub_in) * _rup(Dk, _LANE) * itemsize
    row_v = _rup(L, sub_in) * _rup(Dv, _LANE) * itemsize
    row_mask = _rup(L, _LANE) * 1 if has_mask else 0          # int8 mask
    row_out = _rup(Dv, _LANE) * itemsize
    row_attn = _rup(L, _LANE) * itemsize if return_attn else 0
    row_interm = 4 * (_rup(L, 8) * _rup(Dk, _LANE)            # q*k product
                      + _rup(L, 8) * _rup(Dv, _LANE)          # attn*v product
                      + 3 * _rup(L, _LANE)                    # scores / exp / attn
                      + _rup(Dv, _LANE))                      # out accumulator
    per_row = 2 * (row_q + row_k + row_v + row_mask + row_out + row_attn) + row_interm

    # ---- choose bn: as large as the VMEM budget allows, but never fewer than
    # 2 grid steps (v7x megacore) and preferably >= 4 (pipeline overlap) when N
    # permits.
    if N <= sub:
        bn = N                       # single full block: dims equal array dims
    else:
        n_ceil = _rup(N, sub)
        bn_vmem = max(sub, (vmem_budget_bytes // max(per_row, 1)) // sub * sub)
        desired_steps = 4 if n_ceil >= 4 * sub else 2
        bn_steps = _rup(pl.cdiv(N, desired_steps), sub)
        bn = max(sub, min(bn_vmem, bn_steps, n_ceil))
    grid = (pl.cdiv(N, bn),)         # ragged last tile is benign (rows independent)

    kernel = _make_kernel(has_mask=has_mask, return_attn=return_attn,
                          temperature=float(temperature))

    in_specs = [
        pl.BlockSpec((bn, Dk), lambda i: (i, 0)),
        pl.BlockSpec((bn, L, Dk), lambda i: (i, 0, 0)),
        pl.BlockSpec((bn, L, Dv), lambda i: (i, 0, 0)),
    ]
    inputs = [q, k, v]
    if has_mask:
        in_specs.append(pl.BlockSpec((bn, L), lambda i: (i, 0)))
        inputs.append(mask.astype(jnp.int8))   # 4x less HBM traffic than int32

    if return_attn:
        out_specs = (
            pl.BlockSpec((bn, Dv), lambda i: (i, 0)),
            pl.BlockSpec((bn, L), lambda i: (i, 0)),
        )
        out_shape = (
            jax.ShapeDtypeStruct((N, Dv), out_dtype),
            jax.ShapeDtypeStruct((N, L), out_dtype),
        )
    else:
        out_specs = pl.BlockSpec((bn, Dv), lambda i: (i, 0))
        out_shape = jax.ShapeDtypeStruct((N, Dv), out_dtype)

    bytes_accessed = int((q.size + k.size + v.size) * itemsize
                         + N * Dv * itemsize
                         + (N * L * itemsize if return_attn else 0)
                         + (N * L * 1 if has_mask else 0))
    cost = pl.CostEstimate(
        flops=int(2 * N * L * (Dk + Dv) + 6 * N * L),
        transcendentals=int(N * L),
        bytes_accessed=bytes_accessed,
    )

    res = pl.pallas_call(
        kernel,
        out_shape=out_shape,
        grid_spec=pltpu.PrefetchScalarGridSpec(
            num_scalar_prefetch=0,
            grid=grid,
            in_specs=in_specs,
            out_specs=out_specs,
        ),
        compiler_params=pltpu.CompilerParams(
            dimension_semantics=("parallel",),      # shards across TCs on v7x
            vmem_limit_bytes=vmem_limit_bytes,
        ),
        cost_estimate=cost,
    )(*inputs)

    if return_attn:
        out, attn = res
        return out, attn
    return res


def _reference(q, k, v, temperature, mask=None):
    attn = jnp.sum(q[:, None, :] * k, axis=2) / temperature
    if mask is not None:
        attn = jnp.where(mask, -jnp.inf, attn)
    attn = jax.nn.softmax(attn, axis=1)
    out = jnp.sum(attn[:, :, None] * v, axis=1)
    return out.astype(q.dtype), attn.astype(q.dtype)


if __name__ == "__main__":
    key = jax.random.PRNGKey(0)
    kq, kk, kv, km = jax.random.split(key, 4)

    n_head, batch = 2, 4
    NB = n_head * batch          # q rows = n*b = 8
    L, DK, DV = 8, 32, 32
    temperature = math.sqrt(DK)

    q = jax.random.normal(kq, (NB, DK), dtype=jnp.float32)
    k = jax.random.normal(kk, (NB, L, DK), dtype=jnp.float32)
    v = jax.random.normal(kv, (NB, L, DV), dtype=jnp.float32)

    # --- unmasked path ---
    out, attn = mvsdpa_pallas(q, k, v, temperature)
    jax.block_until_ready((out, attn))
    out_ref, attn_ref = _reference(q, k, v, temperature)
    assert out.shape == (NB, DV) and attn.shape == (NB, L)
    assert out.dtype == q.dtype and attn.dtype == q.dtype
    assert jnp.allclose(out, out_ref, atol=1e-5, rtol=1e-5), "output mismatch"
    assert jnp.allclose(attn, attn_ref, atol=1e-5, rtol=1e-5), "attn mismatch"

    # --- masked path (keep at least one unmasked position per row) ---
    mask = jax.random.bernoulli(km, 0.3, (NB, L))
    mask = mask.at[:, 0].set(False)
    out_m, attn_m = mvsdpa_pallas(q, k, v, temperature, mask=mask)
    jax.block_until_ready((out_m, attn_m))
    out_mr, attn_mr = _reference(q, k, v, temperature, mask=mask)
    assert jnp.allclose(out_m, out_mr, atol=1e-5, rtol=1e-5), "masked output mismatch"
    assert jnp.allclose(attn_m, attn_mr, atol=1e-5, rtol=1e-5), "masked attn mismatch"

    # --- output-only path (no attn writeback) ---
    out_only = mvsdpa_pallas(q, k, v, temperature, mask=mask, return_attn=False)
    jax.block_until_ready(out_only)
    assert jnp.allclose(out_only, out_mr, atol=1e-5, rtol=1e-5), "output-only mismatch"

    print("KERNEL_OK")
</pallas_src>

<mosaic_0001>
module attributes {stable_mosaic.version = 11 : i64} {
  func.func @kernel(%arg0: i32, %arg1: memref<8x32xf32, #tpu.memory_space<vmem>>, %arg2: memref<8x8x32xf32, #tpu.memory_space<vmem>>, %arg3: memref<8x8x32xf32, #tpu.memory_space<vmem>>, %arg4: memref<8x32xf32, #tpu.memory_space<vmem>>, %arg5: memref<8x8xf32, #tpu.memory_space<vmem>>) attributes {dimension_semantics = [#tpu.dimension_semantics<parallel>], iteration_bounds = array<i64: 1>, scalar_prefetch = 0 : i64, scratch_operands = 0 : i64, tpu.core_type = #tpu.core_type<tc>, window_params = [{transform_indices = @transform_0, window_bounds = array<i64: 8, 32>}, {transform_indices = @transform_1, window_bounds = array<i64: 8, 8, 32>}, {transform_indices = @transform_2, window_bounds = array<i64: 8, 8, 32>}, {transform_indices = @transform_3, window_bounds = array<i64: 8, 32>}, {transform_indices = @transform_4, window_bounds = array<i64: 8, 8>}]} {
    %c0 = arith.constant 0 : index
    %c0_0 = arith.constant 0 : index
    %0 = vector.load %arg1[%c0, %c0_0] : memref<8x32xf32, #tpu.memory_space<vmem>>, vector<8x32xf32>
    %c0_1 = arith.constant 0 : index
    %c0_2 = arith.constant 0 : index
    %c0_3 = arith.constant 0 : index
    %1 = vector.load %arg2[%c0_1, %c0_2, %c0_3] : memref<8x8x32xf32, #tpu.memory_space<vmem>>, vector<8x8x32xf32>
    %c0_4 = arith.constant 0 : index
    %c0_5 = arith.constant 0 : index
    %c0_6 = arith.constant 0 : index
    %2 = vector.load %arg3[%c0_4, %c0_5, %c0_6] : memref<8x8x32xf32, #tpu.memory_space<vmem>>, vector<8x8x32xf32>
    %3 = vector.shape_cast %0 : vector<8x32xf32> to vector<8x1x32xf32>
    %4 = vector.broadcast %3 : vector<8x1x32xf32> to vector<8x8x32xf32>
    %5 = arith.mulf %4, %1 : vector<8x8x32xf32>
    %cst = arith.constant dense<0.000000e+00> : vector<8x8xf32>
    %6 = vector.multi_reduction <add>, %5, %cst [2] : vector<8x8x32xf32> to vector<8x8xf32>
    %cst_7 = arith.constant 0.176776692 : f32
    %7 = vector.broadcast %cst_7 : f32 to vector<8x8xf32>
    %8 = arith.mulf %6, %7 : vector<8x8xf32>
    %cst_8 = arith.constant dense<0xFF800000> : vector<8xf32>
    %9 = vector.multi_reduction <maximumf>, %8, %cst_8 [1] : vector<8x8xf32> to vector<8xf32>
    %10 = vector.shape_cast %9 : vector<8xf32> to vector<8x1xf32>
    %11 = vector.broadcast %10 : vector<8x1xf32> to vector<8x8xf32>
    %12 = arith.subf %8, %11 : vector<8x8xf32>
    %13 = math.exp %12 : vector<8x8xf32>
    %cst_9 = arith.constant dense<0.000000e+00> : vector<8xf32>
    %14 = vector.multi_reduction <add>, %13, %cst_9 [1] : vector<8x8xf32> to vector<8xf32>
    %15 = vector.shape_cast %14 : vector<8xf32> to vector<8x1xf32>
    %16 = tpu.reciprocal %15 : vector<8x1xf32> -> vector<8x1xf32>
    %17 = vector.broadcast %16 : vector<8x1xf32> to vector<8x8xf32>
    %18 = arith.mulf %13, %17 : vector<8x8xf32>
    %19 = vector.shape_cast %18 : vector<8x8xf32> to vector<8x8x1xf32>
    %20 = vector.broadcast %19 : vector<8x8x1xf32> to vector<8x8x32xf32>
    %21 = arith.mulf %20, %2 : vector<8x8x32xf32>
    %cst_10 = arith.constant dense<0.000000e+00> : vector<8x32xf32>
    %22 = vector.multi_reduction <add>, %21, %cst_10 [1] : vector<8x8x32xf32> to vector<8x32xf32>
    %c0_11 = arith.constant 0 : index
    %c0_12 = arith.constant 0 : index
    %23 = vector.load %arg4[%c0_11, %c0_12] : memref<8x32xf32, #tpu.memory_space<vmem>>, vector<8x32xf32>
    tpu.vector_store %arg4[%c0_11, %c0_12], %22 {strides = array<i32>} : memref<8x32xf32, #tpu.memory_space<vmem>>, vector<8x32xf32>,
    %c0_13 = arith.constant 0 : index
    %c0_14 = arith.constant 0 : index
    %24 = vector.load %arg5[%c0_13, %c0_14] : memref<8x8xf32, #tpu.memory_space<vmem>>, vector<8x8xf32>
    tpu.vector_store %arg5[%c0_13, %c0_14], %18 {strides = array<i32>} : memref<8x8xf32, #tpu.memory_space<vmem>>, vector<8x8xf32>,
    return
  }
  func.func @transform_0(%arg0: i32) -> (i32, i32) {
    %c0_i32 = arith.constant 0 : i32
    %c0_i32_0 = arith.constant 0 : i32
    return %arg0, %c0_i32 : i32, i32
  }
  func.func @transform_1(%arg0: i32) -> (i32, i32, i32) {
    %c0_i32 = arith.constant 0 : i32
    %c0_i32_0 = arith.constant 0 : i32
    %c0_i32_1 = arith.constant 0 : i32
    return %arg0, %c0_i32, %c0_i32_0 : i32, i32, i32
  }
  func.func @transform_2(%arg0: i32) -> (i32, i32, i32) {
    %c0_i32 = arith.constant 0 : i32
    %c0_i32_0 = arith.constant 0 : i32
    %c0_i32_1 = arith.constant 0 : i32
    return %arg0, %c0_i32, %c0_i32_0 : i32, i32, i32
  }
  func.func @transform_3(%arg0: i32) -> (i32, i32) {
    %c0_i32 = arith.constant 0 : i32
    %c0_i32_0 = arith.constant 0 : i32
    return %arg0, %c0_i32 : i32, i32
  }
  func.func @transform_4(%arg0: i32) -> (i32, i32) {
    %c0_i32 = arith.constant 0 : i32
    %c0_i32_0 = arith.constant 0 : i32
    return %arg0, %c0_i32 : i32, i32
  }
}

</mosaic_0001>

<bundles_post_ra>
// kernel: tpu_custom_call.1
= control target key start
LH: loop header
LB: loop body
LE: loop exit
PB: predicated region body
PF: predicated region fallthrough
CT: control target
= control target key end

     0   :  { %10 = vsyncpa [#allocation3], 0  ;;  %s961_s0 = inlined_call_operand.hbm [shape: f32[8,32], index: 0, kind: input, shape index: {}]   ;;  %s962_s1 = inlined_call_operand.hbm [shape: f32[8,8,32], index: 1, kind: input, shape index: {}]   ;;  %s963_s2 = inlined_call_operand.hbm [shape: f32[8,8,32], index: 2, kind: input, shape index: {}]   ;;  %s964_s3 = inlined_call_operand.hbm [shape: f32[8,32], index: 3, kind: output, shape index: {0}]   ;;  %s965_s4 = inlined_call_operand.hbm [shape: f32[8,8], index: 4, kind: output, shape index: {1}]  }
   0x1   :  { %11 = vsyncpa [#allocation6], 0 }
   0x2   :  { %12 = vsyncpa [#allocation4], 0 }
   0x3   :  { %13 = vsyncpa [#allocation10], 0  ;;  %s786_s15 = smov [#allocation5]  }
   0x4   :  { %s29_s16 = sshll.u32 %s786_s15, 4  ;;  %s30_s16 = int_to_ptr.vmem [resolvable:$true] %s29_s16 }
   0x5   :  { %s686_s17 = scalar_lea.vmem %s30_s16, 1024  ;;  %p691_p1 = scmp.lt.s32.totalorder %s30_s16, %s30_s16 }
   0x6   :  { %p687_p0 = scmp.ne.s32.totalorder %s30_s16, %s686_s17  ;;  %p692_p2 = scmp.lt.s32.totalorder %s686_s17, %s686_s17 }
   0x8   :  { %p693_p3 = por %p692_p2, %p691_p1 }
   0xa   :  { %p694_p4 = pnand %p693_p3, %p687_p0 }
   0xc   :  { %697 = shalt.err (!%p694_p4)
}
   0xd   :  { %s787_s18 = smov 128   ;;  %s788_s19 = smov 8  }
   0xe   :  { %35 = dma.hbm_to_vmem [thread:$0]  %s962_s1, 1024, %s30_s16, [#allocation6], %s787_s18, %s787_s18, %s788_s19  }
   0xf   :  { %s789_s22 = smov [#allocation2]   ;;  %s790_s24 = smov [#allocation7]  }
  0x10   :  { %s20_s23 = sshll.u32 %s789_s22, 4  ;;  %s41_s25 = sshll.u32 %s790_s24, 4  ;;  %s21_s23 = int_to_ptr.vmem [resolvable:$true] %s20_s23  ;;  %s42_s25 = int_to_ptr.vmem [resolvable:$true] %s41_s25 }
  0x11   :  { %s706_s26 = scalar_lea.vmem %s21_s23, 128  ;;  %p711_p6 = scmp.lt.s32.totalorder %s21_s23, %s21_s23 }
  0x12   :  { %p707_p5 = scmp.ne.s32.totalorder %s21_s23, %s706_s26  ;;  %p712_p7 = scmp.lt.s32.totalorder %s706_s26, %s706_s26 }
  0x14   :  { %p713_p8 = por %p712_p7, %p711_p6 }
  0x16   :  { %p714_p9 = pnand %p713_p8, %p707_p5 }
  0x18   :  { %717 = shalt.err (!%p714_p9)
}
  0x19   :  { %23 = dma.hbm_to_vmem [thread:$0]  %s961_s0, 128, %s21_s23, [#allocation3]  }
  0x1a   :  { %s726_s29 = scalar_lea.vmem %s42_s25, 1024  ;;  %p731_p11 = scmp.lt.s32.totalorder %s42_s25, %s42_s25 }
  0x1b   :  { %p727_p10 = scmp.ne.s32.totalorder %s42_s25, %s726_s29  ;;  %p732_p12 = scmp.lt.s32.totalorder %s726_s29, %s726_s29 }
  0x1d   :  { %p733_p13 = por %p732_p12, %p731_p11 }
  0x1f   :  { %p734_p0 = pnand %p733_p13, %p727_p10 }
  0x21   :  { %737 = shalt.err (!%p734_p0)
}
  0x22   :  { %47 = dma.hbm_to_vmem [thread:$0]  %s963_s2, 1024, %s42_s25, [#allocation6], %s787_s18, %s787_s18, %s788_s19  }
  0x23   :  { %778 = dma.done.wait [#allocation3], 128  }
  0x24   :  { %779 = vsyncadd [#allocation3], 4294967168 }
  0x25   :  { %780 = dma.done.wait [#allocation6], 2048  }
  0x26   :  { %781 = vsyncadd [#allocation6], 4294965248  ;;  %v79_v0 = vlaneseq  ;;  %v791_v1 = vmov 1966171168   ;;  %v57_v8 = vld [vmem:[#allocation2] sm:$0xff]  ;;  %v58_v15 = vld [vmem:[#allocation5] sm:$0xff] }
  0x27   :  { %v77_v2 = vunpack.c.l.s4 %v791_v1  ;;  %v75_v11 = vcombine.high %v57_v8, %v57_v8  ;;  %vm172_vm0 = vcmask 261120   ;;  %v60_v20 = vld [vmem:[#allocation5 + $0x10] sm:$0xff]  ;;  %v59_v21 = vld [vmem:[#allocation5 + $0x8] sm:$0xff]  ;;  %v62_v27 = vld [vmem:[#allocation5 + $0x20] sm:$0xff]  ;;  %vm247_vm1 = vcmask 1041409   ;;  %s793_s0 = smov [#allocation9]  }
  0x28   :  { %v829_v3 = vshrl.u32 %v79_v0, 7  ;;  %v214_v4 = vand.u32 127, %v79_v0  ;;  %v61_v28 = vld [vmem:[#allocation5 + $0x18] sm:$0xff]  ;;  %v63_v37 = vld [vmem:[#allocation5 + $0x28] sm:$0xff]  ;;  %v64_v44 = vld [vmem:[#allocation5 + $0x30] sm:$0xff]  ;;  %vm249_vm2 = vcmask 1042434  }
  0x29   :  { %v78_v5 = vunpack.c.0.s8 %v77_v2  ;;  %v65_v48 = vld [vmem:[#allocation5 + $0x38] sm:$0xff]  ;;  %vm251_vm3 = vcmask 1043459   ;;  %vm253_vm4 = vcmask 1044484   ;;  %vm255_vm5 = vcmask 1045509   ;;  %s634_s2 = sshll.u32 %s793_s0, 4  ;;  %s635_s2 = int_to_ptr.vmem [resolvable:$true] %s634_s2 }
  0x2a   :  { %v832_v6 = vsub.s32 %v214_v4, %v829_v3  ;;  %v836_v10 = vsub.s32 0, %v829_v3  ;;  %vm257_vm6 = vcmask 1046534   ;;  %vm259_vm7 = vcmask 1047559   ;;  %s738_s5 = scalar_lea.vmem %s635_s2, 128  ;;  %p743_p2 = scmp.lt.s32.totalorder %s635_s2, %s635_s2 }
  0x2b   :  { %v81_v7 = vsub.s32 %v78_v5, %v829_v3  ;;  %vm262_vm8 = vcmask 64512   ;;  %p739_p1 = scmp.ne.s32.totalorder %s635_s2, %s738_s5  ;;  %p744_p3 = scmp.lt.s32.totalorder %s738_s5, %s738_s5 }
  0x2d   :  { %v82_v9 = vrot.slane %v57_v8, %v81_v7  ;;  %v89_v14 = vrot.slane %v75_v11, %v81_v7  ;;  %p745_p4 = por %p744_p3, %p743_p2 }
  0x2f   :  { %v98_v12 = vrot.slane %v82_v9, %v81_v7  ;;  %v90_v13 = vcombine.high %v82_v9, %v82_v9  ;;  %v105_v19 = vrot.slane %v89_v14, %v81_v7  ;;  %v91_v22 = vcombine.high %v89_v14, %v89_v14  ;;  %p746_p5 = pnand %p745_p4, %p739_p1 }
  0x31   :  { %v127_v16 = vrot.slane %v98_v12, %v836_v10  ;;  %v120_v17 = vcombine.high %v98_v12, %v98_v12  ;;  %v112_v18 = vrot.slane %v90_v13, %v81_v7  ;;  %v143_v29 = vrot.slane %v105_v19, %v836_v10 }
  0x32   :  { %v119_v30 = vrot.slane %v91_v22, %v81_v7  ;;  %v121_v31 = vcombine.high %v105_v19, %v105_v19 }
  0x33   :  { %v164_v23 = vmul.f32 %v127_v16, %v58_v15  ;;  %v135_v24 = vrot.slane %v120_v17, %v836_v10  ;;  %v131_v25 = vrot.slane %v112_v18, %v836_v10  ;;  %v122_v26 = vcombine.high %v112_v18, %v112_v18 }
  0x34   :  { %v168_v36 = vmul.f32 %v143_v29, %v62_v27  ;;  %v147_v38 = vrot.slane %v119_v30, %v836_v10  ;;  %v123_v39 = vcombine.high %v119_v30, %v119_v30  ;;  %v151_v43 = vrot.slane %v121_v31, %v836_v10 }
  0x35   :  { %v173_v32 = vsel %vm172_vm0, %v164_v23, 0.0  ;;  %v166_v33 = vmul.f32 %v135_v24, %v60_v20  ;;  %v165_v34 = vmul.f32 %v131_v25, %v59_v21  ;;  %v139_v35 = vrot.slane %v122_v26, %v836_v10 }
  0x36   :  { %174 = vadd.xlane.f32.xlu0 %v173_v32  ;;  %v169_v46 = vmul.f32 %v147_v38, %v63_v37  ;;  %v155_v47 = vrot.slane %v123_v39, %v836_v10  ;;  %v185_v49 = vsel %vm172_vm0, %v168_v36, 0.0  ;;  %v170_v50 = vmul.f32 %v151_v43, %v64_v44 }
  0x37   :  { %v179_v40 = vsel %vm172_vm0, %v166_v33, 0.0  ;;  %v176_v41 = vsel %vm172_vm0, %v165_v34, 0.0  ;;  %v167_v42 = vmul.f32 %v139_v35, %v61_v28  ;;  %v792_v26 = vmov 0  }
  0x38   :  { %180 = vadd.xlane.f32.xlu1 %v179_v40  ;;  %v188_v51 = vsel %vm172_vm0, %v169_v46, 0.0  ;;  %v171_v52 = vmul.f32 %v155_v47, %v65_v48  ;;  %v191_v53 = vsel %vm172_vm0, %v170_v50, 0.0  ;;  %658 = vset.pattern.permute.xlu0 %v792_v26  ;;  %v273_v27 = vsub.s32 1, %v829_v3 }
  0x39   :  { %v182_v45 = vsel %vm172_vm0, %v167_v42, 0.0  ;;  %657 = vset.pattern.permute.xlu1 %v792_v26  ;;  %v277_v28 = vsub.s32 2, %v829_v3  ;;  %v281_v29 = vsub.s32 3, %v829_v3  ;;  %v285_v34 = vsub.s32 4, %v829_v3 }
  0x3a   :  { %177 = vadd.xlane.f32.xlu0 %v176_v41  ;;  %v194_v54 = vsel %vm172_vm0, %v171_v52, 0.0  ;;  %v289_v41 = vsub.s32 5, %v829_v3 }
  0x3c   :  { %183 = vadd.xlane.f32.xlu1 %v182_v45  ;;  %v293_v45 = vsub.s32 6, %v829_v3 }
  0x3e   :  { %186 = vadd.xlane.f32.xlu0 %v185_v49  ;;  %v297_v49 = vsub.s32 7, %v829_v3 }
  0x40   :  { %189 = vadd.xlane.f32.xlu1 %v188_v51 }
  0x42   :  { %192 = vadd.xlane.f32.xlu0 %v191_v53 }
  0x44   :  { %195 = vadd.xlane.f32.xlu1 %v194_v54 }
  0xbf   :  { %v175_v55 = vpop.xlane.xlu0 %174 }
  0xc0   :  { %v197_v57 = vmul.f32 0.17677669, %v175_v55 }
  0xc1   :  { %v181_v56 = vpop.xlane.xlu1 %180 }
  0xc2   :  { %v199_v58 = vmul.f32 0.17677669, %v181_v56  ;;  %v218_v62 = vrot.slane %v197_v57, %v832_v6 }
  0xc3   :  { %v178_v59 = vpop.xlane.xlu0 %177 }
  0xc4   :  { %v198_v60 = vmul.f32 0.17677669, %v178_v59  ;;  %v226_v1 = vrot.slane %v199_v58, %v832_v6 }
  0xc5   :  { %v184_v61 = vpop.xlane.xlu1 %183 }
  0xc6   :  { %v222_v63 = vrot.slane %v198_v60, %v832_v6  ;;  %v200_v0 = vmul.f32 0.17677669, %v184_v61 }
  0xc7   :  { %v187_v2 = vpop.xlane.xlu0 %186 }
  0xc8   :  { %v248_v4 = vsel %vm247_vm1, %v222_v63, %v218_v62  ;;  %v230_v5 = vrot.slane %v200_v0, %v832_v6  ;;  %v201_v7 = vmul.f32 0.17677669, %v187_v2 }
  0xc9   :  { %v250_v8 = vsel %vm249_vm2, %v226_v1, %v248_v4  ;;  %v190_v9 = vpop.xlane.xlu1 %189 }
  0xca   :  { %v252_v11 = vsel %vm251_vm3, %v230_v5, %v250_v8  ;;  %v234_v12 = vrot.slane %v201_v7, %v832_v6  ;;  %v202_v13 = vmul.f32 0.17677669, %v190_v9 }
  0xcb   :  { %v193_v14 = vpop.xlane.xlu0 %192 }
  0xcc   :  { %v254_v15 = vsel %vm253_vm4, %v234_v12, %v252_v11  ;;  %v238_v16 = vrot.slane %v202_v13, %v832_v6  ;;  %v203_v17 = vmul.f32 0.17677669, %v193_v14 }
  0xcd   :  { %v196_v18 = vpop.xlane.xlu1 %195 }
  0xce   :  { %v242_v19 = vrot.slane %v203_v17, %v832_v6  ;;  %v204_v20 = vmul.f32 0.17677669, %v196_v18  ;;  %v256_v21 = vsel %vm255_vm5, %v238_v16, %v254_v15 }
  0xd0   :  { %v246_v22 = vrot.slane %v204_v20, %v832_v6  ;;  %v258_v23 = vsel %vm257_vm6, %v242_v19, %v256_v21 }
  0xd2   :  { %v260_v24 = vsel %vm259_vm7, %v246_v22, %v258_v23 }
  0xd3   :  { %v263_v25 = vsel %vm262_vm8, %v260_v24, -inf }
  0xd4   :  { %264 = vmax.xlane.f32.xlu0 %v263_v25 }
 0x15d   :  { %v265_v30 = vpop.xlane.xlu0 %264 }
 0x15e   :  { %v270_v31 = vrot.slane %v265_v30, %v836_v10  ;;  %v274_v32 = vrot.slane %v265_v30, %v273_v27  ;;  %v278_v33 = vrot.slane %v265_v30, %v277_v28  ;;  %v282_v35 = vrot.slane %v265_v30, %v281_v29 }
 0x15f   :  { %v286_v42 = vrot.slane %v265_v30, %v285_v34  ;;  %v290_v46 = vrot.slane %v265_v30, %v289_v41  ;;  %v294_v50 = vrot.slane %v265_v30, %v293_v45  ;;  %v298_v53 = vrot.slane %v265_v30, %v297_v49 }
 0x160   :  { %v307_v36 = vsub.f32 %v197_v57, %v270_v31  ;;  %v308_v37 = vsub.f32 %v198_v60, %v274_v32  ;;  %v309_v38 = vsub.f32 %v199_v58, %v278_v33  ;;  %v310_v43 = vsub.f32 %v200_v0, %v282_v35 }
 0x161   :  { %v311_v47 = vsub.f32 %v201_v7, %v286_v42  ;;  %v312_v51 = vsub.f32 %v202_v13, %v290_v46  ;;  %v313_v54 = vsub.f32 %v203_v17, %v294_v50  ;;  %v314_v58 = vsub.f32 %v204_v20, %v298_v53  ;;  %v66_v53 = vld [vmem:[#allocation7] sm:$0xff] }
 0x162   :  { %v315_v39 = vmul.f32 1.442695, %v307_v36  ;;  %v317_v40 = vmul.f32 1.442695, %v308_v37  ;;  %v319_v44 = vmul.f32 1.442695, %v309_v38 }
 0x163   :  { %v321_v48 = vmul.f32 1.442695, %v310_v43  ;;  %v323_v52 = vmul.f32 1.442695, %v311_v47  ;;  %v325_v55 = vmul.f32 1.442695, %v312_v51 }
 0x164   :  { %660 = vpow2.f32 %v315_v39  ;;  %v327_v59 = vmul.f32 1.442695, %v313_v54  ;;  %v329_v61 = vmul.f32 1.442695, %v314_v58  ;;  %v68_v54 = vld [vmem:[#allocation7 + $0x10] sm:$0xff]  ;;  %v69_v58 = vld [vmem:[#allocation7 + $0x18] sm:$0xff] }
 0x165   :  { %662 = vpow2.f32 %v317_v40 }
 0x166   :  { %664 = vpow2.f32 %v319_v44 }
 0x167   :  { %666 = vpow2.f32 %v321_v48 }
 0x168   :  { %668 = vpow2.f32 %v323_v52 }
 0x169   :  { %670 = vpow2.f32 %v325_v55 }
 0x16a   :  { %672 = vpow2.f32 %v327_v59 }
 0x16b   :  { %674 = vpow2.f32 %v329_v61 }
 0x171   :  { %v661_v56 = vpop.eup %660 }
 0x172   :  { %v663_v57 = vpop.eup %662  ;;  %340 = vperm.xlu1 %657, %v661_v56  }
 0x173   :  { %343 = vperm.xlu0 %658, %v663_v57   ;;  %v665_v60 = vpop.eup %664 }
 0x174   :  { %v667_v62 = vpop.eup %666 }
 0x175   :  { %v669_v63 = vpop.eup %668 }
 0x176   :  { %346 = vperm.xlu1 %657, %v665_v60   ;;  %v671_v0 = vpop.eup %670 }
 0x177   :  { %v673_v1 = vpop.eup %672 }
 0x178   :  { %v675_v2 = vpop.eup %674 }
 0x17a   :  { %349 = vperm.xlu1 %657, %v667_v62  }
 0x17e   :  { %352 = vperm.xlu1 %657, %v669_v63  }
 0x182   :  { %355 = vperm.xlu1 %657, %v671_v0  }
 0x186   :  { %358 = vperm.xlu1 %657, %v673_v1  }
 0x18a   :  { %361 = vperm.xlu1 %657, %v675_v2  }
 0x1ed   :  { %v341_v4 = vpop.permute.xlu1 %340 }
 0x1ee   :  { %v344_v9 = vpop.permute.xlu0 %343  ;;  %v366_v13 = vrot.slane %v341_v4, %v832_v6 }
 0x1ef   :  { %v370_v12 = vrot.slane %v344_v9, %v832_v6 }
 0x1f1   :  { %v347_v5 = vpop.permute.xlu1 %346  ;;  %v395_v18 = vsel %vm247_vm1, %v370_v12, %v366_v13 }
 0x1f2   :  { %v374_v14 = vrot.slane %v347_v5, %v832_v6 }
 0x1f4   :  { %v396_v20 = vsel %vm249_vm2, %v374_v14, %v395_v18 }
 0x1f5   :  { %v350_v7 = vpop.permute.xlu1 %349 }
 0x1f6   :  { %v378_v15 = vrot.slane %v350_v7, %v832_v6 }
 0x1f8   :  { %v397_v22 = vsel %vm251_vm3, %v378_v15, %v396_v20 }
 0x1f9   :  { %v353_v8 = vpop.permute.xlu1 %352 }
 0x1fa   :  { %v382_v16 = vrot.slane %v353_v8, %v832_v6  ;;  %v71_v8 = vld [vmem:[#allocation7 + $0x28] sm:$0xff] }
 0x1fc   :  { %v398_v23 = vsel %vm253_vm4, %v382_v16, %v397_v22  ;;  %v72_v22 = vld [vmem:[#allocation7 + $0x30] sm:$0xff] }
 0x1fd   :  { %v356_v11 = vpop.permute.xlu1 %355 }
 0x1fe   :  { %v386_v19 = vrot.slane %v356_v11, %v832_v6 }
 0x200   :  { %v399_v25 = vsel %vm255_vm5, %v386_v19, %v398_v23 }
 0x201   :  { %v359_v17 = vpop.permute.xlu1 %358 }
 0x202   :  { %v390_v21 = vrot.slane %v359_v17, %v832_v6 }
 0x204   :  { %v400_v30 = vsel %vm257_vm6, %v390_v21, %v399_v25 }
 0x205   :  { %v362_v24 = vpop.permute.xlu1 %361 }
 0x206   :  { %v394_v26 = vrot.slane %v362_v24, %v832_v6 }
 0x208   :  { %v401_v31 = vsel %vm259_vm7, %v394_v26, %v400_v30 }
 0x209   :  { %v403_v32 = vsel %vm262_vm8, %v401_v31, 0.0 }
 0x20a   :  { %404 = vadd.xlane.f32.xlu1 %v403_v32 }
 0x293   :  { %v405_v33 = vpop.xlane.xlu1 %404 }
 0x294   :  { %676 = vrcp.f32 %v405_v33 }
 0x2a1   :  { %v677_v35 = vpop.eup %676 }
 0x2a2   :  { %v411_v36 = vrot.slane %v677_v35, %v836_v10  ;;  %v415_v38 = vrot.slane %v677_v35, %v273_v27  ;;  %v419_v40 = vrot.slane %v677_v35, %v277_v28  ;;  %v423_v43 = vrot.slane %v677_v35, %v281_v29 }
 0x2a3   :  { %v427_v46 = vrot.slane %v677_v35, %v285_v34  ;;  %v431_v27 = vrot.slane %v677_v35, %v289_v41  ;;  %v435_v28 = vrot.slane %v677_v35, %v293_v45  ;;  %v439_v29 = vrot.slane %v677_v35, %v297_v49  ;;  %v67_v34 = vld [vmem:[#allocation7 + $0x8] sm:$0xff] }
 0x2a4   :  { %v448_v37 = vmul.f32 %v661_v56, %v411_v36  ;;  %v449_v39 = vmul.f32 %v663_v57, %v415_v38  ;;  %v450_v42 = vmul.f32 %v665_v60, %v419_v40  ;;  %v451_v44 = vmul.f32 %v667_v62, %v423_v43  ;;  %v70_v62 = vld [vmem:[#allocation7 + $0x20] sm:$0xff] }
 0x2a5   :  { %v452_v10 = vmul.f32 %v669_v63, %v427_v46  ;;  %v453_v47 = vmul.f32 %v671_v0, %v431_v27  ;;  %v454_v48 = vmul.f32 %v673_v1, %v435_v28  ;;  %v455_v50 = vmul.f32 %v675_v2, %v439_v29 }
 0x2a6   :  { %458 = vperm.xlu0 %658, %v448_v37  }
 0x2aa   :  { %463 = vperm.xlu0 %658, %v449_v39  }
 0x2ae   :  { %468 = vperm.xlu0 %658, %v450_v42  }
 0x2b2   :  { %473 = vperm.xlu0 %658, %v451_v44   ;;  %v73_v44 = vld [vmem:[#allocation7 + $0x38] sm:$0xff] }
 0x2b6   :  { %478 = vperm.xlu0 %658, %v452_v10  }
 0x2ba   :  { %483 = vperm.xlu0 %658, %v453_v47  }
 0x2be   :  { %488 = vperm.xlu0 %658, %v454_v48  }
 0x2c2   :  { %493 = vperm.xlu0 %658, %v455_v50  }
 0x321   :  { %v459_v51 = vpop.permute.xlu0 %458 }
 0x322   :  { %v496_v41 = vmul.f32 %v459_v51, %v66_v53  ;;  %v580_v18 = vrot.slane %v459_v51, %v832_v6 }
 0x324   :  { %v504_v59 = vsel %vm172_vm0, %v496_v41, 0.0 }
 0x325   :  { %v464_v52 = vpop.permute.xlu0 %463  ;;  %v505_v63 = vrot.slane %v504_v59, 4 }
 0x326   :  { %v497_v55 = vmul.f32 %v464_v52, %v67_v34  ;;  %v584_v16 = vrot.slane %v464_v52, %v832_v6 }
 0x327   :  { %v506_v9 = vadd.f32 %v505_v63, %v504_v59 }
 0x328   :  { %v511_v45 = vsel %vm172_vm0, %v497_v55, 0.0  ;;  %v609_v35 = vsel %vm247_vm1, %v584_v16, %v580_v18 }
 0x329   :  { %v469_v56 = vpop.permute.xlu0 %468  ;;  %v512_v61 = vrot.slane %v511_v45, 4  ;;  %v507_v23 = vrot.slane %v506_v9, 2 }
 0x32a   :  { %v498_v57 = vmul.f32 %v469_v56, %v68_v54  ;;  %v588_v20 = vrot.slane %v469_v56, %v832_v6 }
 0x32b   :  { %v513_v7 = vadd.f32 %v512_v61, %v511_v45  ;;  %v508_v46 = vadd.f32 %v507_v23, %v506_v9 }
 0x32c   :  { %v518_v3 = vsel %vm172_vm0, %v498_v57, 0.0  ;;  %v610_v40 = vsel %vm249_vm2, %v588_v20, %v609_v35 }
 0x32d   :  { %v474_v49 = vpop.permute.xlu0 %473  ;;  %v519_v0 = vrot.slane %v518_v3, 4  ;;  %v514_v19 = vrot.slane %v513_v7, 2 }
 0x32e   :  { %v499_v60 = vmul.f32 %v474_v49, %v69_v58  ;;  %v592_v25 = vrot.slane %v474_v49, %v832_v6 }
 0x32f   :  { %v520_v11 = vadd.f32 %v519_v0, %v518_v3  ;;  %v515_v39 = vadd.f32 %v514_v19, %v513_v7  ;;  %v509_v3 = vrot.slane %v508_v46, 1 }
 0x330   :  { %v525_v1 = vsel %vm172_vm0, %v499_v60, 0.0  ;;  %v611_v27 = vsel %vm251_vm3, %v592_v25, %v610_v40 }
 0x331   :  { %v526_v2 = vrot.slane %v525_v1, 4  ;;  %v479_v4 = vpop.permute.xlu0 %478  ;;  %v521_v24 = vrot.slane %v520_v11, 2  ;;  %v516_v55 = vrot.slane %v515_v39, 1 }
 0x332   :  { %v500_v5 = vmul.f32 %v479_v4, %v70_v62  ;;  %v596_v31 = vrot.slane %v479_v4, %v832_v6 }
 0x333   :  { %v527_v13 = vadd.f32 %v526_v2, %v525_v1  ;;  %v522_v10 = vadd.f32 %v521_v24, %v520_v11 }
 0x334   :  { %v532_v12 = vsel %vm172_vm0, %v500_v5, 0.0  ;;  %v612_v48 = vsel %vm253_vm4, %v596_v31, %v611_v27 }
 0x335   :  { %v533_v14 = vrot.slane %v532_v12, 4  ;;  %v484_v15 = vpop.permute.xlu0 %483  ;;  %v528_v30 = vrot.slane %v527_v13, 2  ;;  %v523_v58 = vrot.slane %v522_v10, 1 }
 0x336   :  { %v501_v17 = vmul.f32 %v484_v15, %v71_v8  ;;  %v600_v37 = vrot.slane %v484_v15, %v832_v6 }
 0x337   :  { %v534_v21 = vadd.f32 %v533_v14, %v532_v12  ;;  %v529_v28 = vadd.f32 %v528_v30, %v527_v13 }
 0x338   :  { %v539_v26 = vsel %vm172_vm0, %v501_v17, 0.0  ;;  %v613_v52 = vsel %vm255_vm5, %v600_v37, %v612_v48 }
 0x339   :  { %v540_v32 = vrot.slane %v539_v26, 4  ;;  %v489_v33 = vpop.permute.xlu0 %488  ;;  %v535_v36 = vrot.slane %v534_v21, 2  ;;  %v530_v49 = vrot.slane %v529_v28, 1 }
 0x33a   :  { %v502_v38 = vmul.f32 %v489_v33, %v72_v22  ;;  %v604_v43 = vrot.slane %v489_v33, %v832_v6 }
 0x33b   :  { %v541_v42 = vadd.f32 %v540_v32, %v539_v26  ;;  %v536_v34 = vadd.f32 %v535_v36, %v534_v21 }
 0x33c   :  { %v546_v47 = vsel %vm172_vm0, %v502_v38, 0.0  ;;  %v614_v57 = vsel %vm257_vm6, %v604_v43, %v613_v52 }
 0x33d   :  { %v542_v29 = vrot.slane %v541_v42, 2  ;;  %v547_v50 = vrot.slane %v546_v47, 4  ;;  %v494_v51 = vpop.permute.xlu0 %493  ;;  %v537_v62 = vrot.slane %v536_v34, 1 }
 0x33e   :  { %v503_v53 = vmul.f32 %v494_v51, %v73_v44  ;;  %v608_v54 = vrot.slane %v494_v51, %v832_v6 }
 0x33f   :  { %v543_v41 = vadd.f32 %v542_v29, %v541_v42  ;;  %v548_v56 = vadd.f32 %v547_v50, %v546_v47 }
 0x340   :  { %v553_v45 = vsel %vm172_vm0, %v503_v53, 0.0  ;;  %v615_v59 = vsel %vm259_vm7, %v608_v54, %v614_v57 }
 0x341   :  { %v549_v60 = vrot.slane %v548_v56, 2  ;;  %v554_v61 = vrot.slane %v553_v45, 4  ;;  %617 = vst.msk [vmem:[#allocation9] sm:$0xff] %vm262_vm8, %v615_v59 }
 0x342   :  { %749 = shalt.err (!%p746_p5)
}
 0x343   :  { %637 = dma.vmem_to_hbm [thread:$0]  %s635_s2, 128, %s965_s4, [#allocation10]   ;;  %v517_v6 = vadd.f32 %v516_v55, %v515_v39  ;;  %v544_v63 = vrot.slane %v543_v41, 1  ;;  %v550_v0 = vadd.f32 %v549_v60, %v548_v56  ;;  %v555_v1 = vadd.f32 %v554_v61, %v553_v45 }
 0x344   :  { %v524_v2 = vadd.f32 %v523_v58, %v522_v10  ;;  %v510_v4 = vadd.f32 %v509_v3, %v508_v46  ;;  %v531_v5 = vadd.f32 %v530_v49, %v529_v28  ;;  %v538_v9 = vadd.f32 %v537_v62, %v536_v34  ;;  %s794_s4 = smov [#allocation8]  }
 0x345   :  { %v551_v7 = vrot.slane %v550_v0, 1  ;;  %v556_v8 = vrot.slane %v555_v1, 2  ;;  %v545_v12 = vadd.f32 %v544_v63, %v543_v41  ;;  %s624_s8 = sshll.u32 %s794_s4, 4  ;;  %s625_s8 = int_to_ptr.vmem [resolvable:$true] %s624_s8 }
 0x346   :  { %v568_v11 = vsel %vm247_vm1, %v517_v6, %v510_v4  ;;  %s758_s9 = scalar_lea.vmem %s625_s8, 128  ;;  %p763_p7 = scmp.lt.s32.totalorder %s625_s8, %s625_s8 }
 0x347   :  { %v557_v13 = vadd.f32 %v556_v8, %v555_v1  ;;  %v569_v14 = vsel %vm249_vm2, %v524_v2, %v568_v11  ;;  %v552_v15 = vadd.f32 %v551_v7, %v550_v0  ;;  %p759_p6 = scmp.ne.s32.totalorder %s625_s8, %s758_s9  ;;  %p764_p8 = scmp.lt.s32.totalorder %s758_s9, %s758_s9 }
 0x348   :  { %v570_v17 = vsel %vm251_vm3, %v531_v5, %v569_v14 }
 0x349   :  { %v558_v16 = vrot.slane %v557_v13, 1  ;;  %v571_v18 = vsel %vm253_vm4, %v538_v9, %v570_v17  ;;  %p765_p9 = por %p764_p8, %p763_p7 }
 0x34a   :  { %v572_v20 = vsel %vm255_vm5, %v545_v12, %v571_v18 }
 0x34b   :  { %v559_v19 = vadd.f32 %v558_v16, %v557_v13  ;;  %v573_v21 = vsel %vm257_vm6, %v552_v15, %v572_v20  ;;  %p766_p10 = pnand %p765_p9, %p759_p6 }
 0x34d   :  { %v574_v22 = vsel %vm259_vm7, %v559_v19, %v573_v21 }
 0x34e   :  { %576 = vst.msk [vmem:[#allocation8] sm:$0xff] %vm172_vm0, %v574_v22 }
 0x34f   :  { %769 = shalt.err (!%p766_p10)
}
 0x350   :  { %627 = dma.vmem_to_hbm [thread:$0]  %s625_s8, 128, %s964_s3, [#allocation4]  }
 0x351   :  { %782 = dma.done.wait [#allocation4], 128  }
 0x352   :  { %783 = vsyncadd [#allocation4], 4294967168 }
 0x353   :  { %784 = dma.done.wait [#allocation10], 128  }
 0x354   :  { %785 = vsyncadd [#allocation10], 4294967168 }
 0x355   :  { %644 = vsyncpa [#allocation3], 1 }
 0x356   :  { %645 = vsyncpa [#allocation6], 1 }
 0x357   :  { %646 = vsyncpa [#allocation4], 1 }
 0x358   :  { %647 = vsyncpa [#allocation10], 1 }

</bundles_post_ra>
